<compile_context>
chip_gen: v6e
topology: v6e:2x2x1
jax: 0.10.0
libtpu: 0.0.40
codegen_flags: <defaults>
</compile_context>

<pallas_src>
import numpy as np
import jax
import jax.numpy as jnp
from jax.experimental import pallas as pl
from jax.experimental.pallas import tpu as pltpu


def pairwise_conv_kernel(xw1_ref, g_ref, xw0_ref, inv_ref, out_ref, acc_ref):
    # xw1_ref: (Mp, tk)   f32  W1 @ x, K tile            (streamed over k)
    # g_ref:   (tk, tn)   bf16 edge-count matrix block    (dominant HBM stream)
    # xw0_ref: (Mp, tn)   f32  (W0 @ x + bias) * deg / denom  (constant over k)
    # inv_ref: (1,  tn)   f32  1 / denom                      (constant over k)
    # out_ref: (Mp, tn)   f32
    # acc_ref: (Mp, tn)   f32  VMEM scratch accumulator
    k = pl.program_id(1)

    @pl.when(k == 0)
    def _():
        acc_ref[...] = jnp.zeros_like(acc_ref)

    acc_ref[...] += jnp.dot(xw1_ref[...], g_ref[...].astype(jnp.float32),
                            preferred_element_type=jnp.float32)

    @pl.when(k == pl.num_programs(1) - 1)
    def _():
        out_ref[...] = acc_ref[...] * inv_ref[...] + xw0_ref[...]


def pairwise_conv_pallas(xw1, g, xw0, inv):
    m_pad, lp = xw1.shape

    # >= 2 lane-aligned column tiles on the parallel axis (lp is a multiple
    # of 512, so lp // 2 is always a multiple of 256).
    tn = 512 if lp >= 1024 else lp // 2
    # K tile bounds VMEM independent of sequence length.
    tk = min(lp, 1024)
    grid = (lp // tn, lp // tk)

    # Explicit scoped-VMEM budget from the double-buffered tile footprint.
    g_bytes = np.dtype(g.dtype).itemsize
    footprint = (2 * tk * tn * g_bytes        # G tiles
                 + 2 * m_pad * tk * 4         # xw1 tiles
                 + 2 * m_pad * tn * 4         # xw0 tiles
                 + 2 * tn * 4                 # inv tiles
                 + 2 * m_pad * tn * 4         # output tiles
                 + m_pad * tn * 4)            # accumulator scratch
    vmem_bytes = int(min(max(2 * footprint, 32 << 20), 48 << 20))

    return pl.pallas_call(
        pairwise_conv_kernel,
        out_shape=jax.ShapeDtypeStruct((m_pad, lp), jnp.float32),
        grid=grid,
        in_specs=[
            pl.BlockSpec((m_pad, tk), lambda j, k: (0, k)),   # xw1 (K tile)
            pl.BlockSpec((tk, tn), lambda j, k: (k, j)),      # G block
            pl.BlockSpec((m_pad, tn), lambda j, k: (0, j)),   # xw0 (pre-scaled)
            pl.BlockSpec((1, tn), lambda j, k: (0, j)),       # 1 / denom
        ],
        out_specs=pl.BlockSpec((m_pad, tn), lambda j, k: (0, j)),
        scratch_shapes=[pltpu.VMEM((m_pad, tn), jnp.float32)],
        compiler_params=pltpu.CompilerParams(
            dimension_semantics=("parallel", "arbitrary"),
            vmem_limit_bytes=vmem_bytes),
    )(xw1, g, xw0, inv)


# ------------------------- host glue (numpy, sparse structure) ---------------

def pairwise_conv_forward(x, adj_indices, adj_values, w, bias, max_distance):
    """Full forward (default config): sparse glue on host, hot path in Pallas."""
    x = np.asarray(x, np.float32)
    B, C_in, L = x.shape
    C_conv = w.shape[0]

    src = np.asarray(adj_indices[0], np.int64)
    dst = np.asarray(adj_indices[1], np.int64)
    vals = np.asarray(adj_values, np.float32)

    # cut_to_max_distance (sparse mask).
    if max_distance:
        keep = vals <= max_distance
        src, dst, vals = src[keep], dst[keep], vals[keep]

    # adj.to_dense().sum(dim=0); np.add.at sums duplicate entries like to_dense().
    adj_sum = np.zeros((L,), np.float32)
    np.add.at(adj_sum, dst, vals)

    # deg[l] = #edges with source l; G[j, l] = #edges (src=l, dst=j).
    deg = np.zeros((L,), np.float32)
    np.add.at(deg, src, 1.0)
    g = np.zeros((L, L), np.float32)
    np.add.at(g, (dst, src), 1.0)

    # Module semantics: denominator is adj_sum with zeros replaced by 1
    # (adj_sum_clamped[adj_sum_clamped == 0] = 1), NOT clamp(min=1).
    denom = np.where(adj_sum == 0.0, 1.0, adj_sum).astype(np.float32)
    inv = (1.0 / denom).astype(np.float32)
    dinv = (deg * inv).astype(np.float32)

    # Pad sequence axis to a multiple of 512 (>= 512). Exact no-op: padded
    # positions have deg == 0 and all-zero G rows/columns.
    lp = max(512, -(-L // 512) * 512)
    pad = lp - L
    x_p = np.pad(x, ((0, 0), (0, 0), (0, pad)))
    g_p = np.pad(g, ((0, pad), (0, pad)))
    inv_p = np.pad(inv, (0, pad), constant_values=1.0)
    dinv_p = np.pad(dinv, (0, pad))

    # G holds small exact integer counts -> bf16 is exact up to 255 and halves
    # the dominant HBM stream.  x/xw1 stay f32 to preserve 1e-5 f32 parity.
    g_dtype = jnp.bfloat16 if float(g.max()) < 256.0 else jnp.float32

    # Weight application hoisted out of the kernel (tiny einsums, no kron).
    w0 = jnp.asarray(w[:, :, 0], jnp.float32)
    w1 = jnp.asarray(w[:, :, 1], jnp.float32)
    b = jnp.asarray(bias, jnp.float32)
    xj = jnp.asarray(x_p)
    xw1 = jnp.einsum('oc,bcl->bol', w1, xj).reshape(B * C_conv, lp)
    xw0 = (jnp.einsum('oc,bcl->bol', w0, xj) + b[None, :, None]
           ).reshape(B * C_conv, lp) * jnp.asarray(dinv_p)[None, :]

    # Pad M = B*C_conv to a multiple of 8 (f32 sublane) with zero rows.
    m_out = B * C_conv
    m_pad = -(-m_out // 8) * 8
    if m_pad != m_out:
        xw1 = jnp.pad(xw1, ((0, m_pad - m_out), (0, 0)))
        xw0 = jnp.pad(xw0, ((0, m_pad - m_out), (0, 0)))

    out2 = pairwise_conv_pallas(
        xw1,
        jnp.asarray(g_p).astype(g_dtype),
        xw0,
        jnp.asarray(inv_p).reshape(1, lp))               # (m_pad, lp)

    z = out2[:m_out].reshape(B, C_conv, lp)[:, :, :L]
    # add_counts: counts channel is batch-invariant -> appended once here.
    counts = jnp.broadcast_to(jnp.asarray(adj_sum)[None, None, :], (B, 1, L))
    return jnp.concatenate([z, counts], axis=1)          # (B, C_conv + 1, L)


# ------------------------- reference (PyTorch chain, pure numpy) -------------

def reference_forward(x, adj_indices, adj_values, w, bias, max_distance):
    x = np.asarray(x, np.float32)
    B, C_in, L = x.shape
    src = np.asarray(adj_indices[0], np.int64)
    dst = np.asarray(adj_indices[1], np.int64)
    vals = np.asarray(adj_values, np.float32)
    if max_distance:
        keep = vals <= max_distance
        src, dst, vals = src[keep], dst[keep], vals[keep]
    nnz = src.shape[0]
    adj_pw = np.zeros((2 * nnz, L), np.float32)          # expand_adjacency_tensor
    adj_pw[np.arange(0, 2 * nnz, 2), src] = 1.0
    adj_pw[np.arange(1, 2 * nnz, 2), dst] = 1.0
    y = np.einsum('bcl,el->bce', x, adj_pw)              # x @ adj_pw.T
    conv = (np.einsum('oc,bcp->bop', w[:, :, 0], y[:, :, 0::2])
            + np.einsum('oc,bcp->bop', w[:, :, 1], y[:, :, 1::2])
            + np.asarray(bias, np.float32)[None, :, None])   # Conv1d k=2 s=2
    z = np.einsum('bop,pl->bol', conv, adj_pw[0::2])     # @ adj_pw[::2]
    adj_dense = np.zeros((L, L), np.float32)
    np.add.at(adj_dense, (src, dst), vals)
    adj_sum = adj_dense.sum(axis=0)
    denom = np.where(adj_sum == 0.0, 1.0, adj_sum)       # module: zeros -> 1
    z = z / denom[None, None, :]
    counts = np.broadcast_to(adj_sum[None, None, :], (B, 1, L))
    return np.concatenate([z, counts], axis=1).astype(np.float32)


if __name__ == "__main__":
    B, C_in, L = 2, 4, 16
    out_channels = 4             # module out_channels
    C_conv = out_channels - 1    # add_counts=True -> conv emits out_channels-1
    max_distance = 10.0

    key = jax.random.PRNGKey(0)
    kx, kv, kw, kb = jax.random.split(key, 4)

    x = jax.random.normal(kx, (B, C_in, L), dtype=jnp.float32)

    # Sparse adjacency: edges (i, i+1), (i, i+4) plus one deliberate duplicate
    # edge (3, 4) to exercise duplicate accumulation; values = distances.
    src = np.array([i for i in range(L - 1)] + [i for i in range(L - 4)] + [3],
                   dtype=np.int64)
    dst = np.array([i + 1 for i in range(L - 1)] + [i + 4 for i in range(L - 4)] + [4],
                   dtype=np.int64)
    nnz = src.shape[0]
    adj_indices = np.stack([src, dst])                   # (2, nnz)
    adj_values = np.asarray(
        jax.random.uniform(kv, (nnz,), minval=2.0, maxval=14.0), np.float32)

    # Conv1d(in=C_in, out=C_conv, kernel_size=2, stride=2, bias=True) params.
    w = np.asarray(jax.random.normal(kw, (C_conv, C_in, 2), dtype=jnp.float32) * 0.1,
                   np.float32)
    bias = np.asarray(jax.random.normal(kb, (C_conv,), dtype=jnp.float32) * 0.1,
                      np.float32)

    out = pairwise_conv_forward(np.asarray(x), adj_indices, adj_values, w, bias,
                                max_distance)
    out = jax.block_until_ready(out)

    ref = reference_forward(np.asarray(x), adj_indices, adj_values, w, bias,
                            max_distance)
    np.testing.assert_allclose(np.asarray(out), ref, rtol=1e-5, atol=1e-5)

    print("KERNEL_OK")
</pallas_src>

<mosaic_0001>
module attributes {stable_mosaic.version = 11 : i64} {
  func.func @pairwise_conv_kernel(%arg0: i32, %arg1: i32, %arg2: memref<8x512xf32, #tpu.memory_space<vmem>>, %arg3: memref<512x256xbf16, #tpu.memory_space<vmem>>, %arg4: memref<8x256xf32, #tpu.memory_space<vmem>>, %arg5: memref<1x256xf32, #tpu.memory_space<vmem>>, %arg6: memref<8x256xf32, #tpu.memory_space<vmem>>, %arg7: memref<8x256xf32, #tpu.memory_space<vmem>>) attributes {dimension_semantics = [#tpu.dimension_semantics<parallel>, #tpu.dimension_semantics<arbitrary>], iteration_bounds = array<i64: 2, 1>, scalar_prefetch = 0 : i64, scratch_operands = 1 : i64, tpu.core_type = #tpu.core_type<tc>, window_params = [{transform_indices = @transform_0, window_bounds = array<i64: 8, 512>}, {transform_indices = @transform_1, window_bounds = array<i64: 512, 256>}, {transform_indices = @transform_2, window_bounds = array<i64: 8, 256>}, {transform_indices = @transform_3, window_bounds = array<i64: 1, 256>}, {transform_indices = @transform_4, window_bounds = array<i64: 8, 256>}]} {
    %c0_i32 = arith.constant 0 : i32
    %0 = arith.cmpi eq, %arg1, %c0_i32 : i32
    %1 = arith.extui %0 : i1 to i32
    %c0_i32_0 = arith.constant 0 : i32
    %2 = arith.cmpi ne, %1, %c0_i32_0 : i32
    scf.if %2 {
      %cst_10 = arith.constant 0.000000e+00 : f32
      %13 = vector.broadcast %cst_10 : f32 to vector<8x256xf32>
      %c0_11 = arith.constant 0 : index
      %c0_12 = arith.constant 0 : index
      %14 = vector.load %arg7[%c0_11, %c0_12] : memref<8x256xf32, #tpu.memory_space<vmem>>, vector<8x256xf32>
      tpu.vector_store %arg7[%c0_11, %c0_12], %13 {strides = array<i32>} : memref<8x256xf32, #tpu.memory_space<vmem>>, vector<8x256xf32>,
    } else {
    }
    %c0 = arith.constant 0 : index
    %c0_1 = arith.constant 0 : index
    %3 = vector.load %arg7[%c0, %c0_1] : memref<8x256xf32, #tpu.memory_space<vmem>>, vector<8x256xf32>
    %c0_2 = arith.constant 0 : index
    %c0_3 = arith.constant 0 : index
    %4 = vector.load %arg2[%c0_2, %c0_3] : memref<8x512xf32, #tpu.memory_space<vmem>>, vector<8x512xf32>
    %c0_4 = arith.constant 0 : index
    %c0_5 = arith.constant 0 : index
    %5 = vector.load %arg3[%c0_4, %c0_5] : memref<512x256xbf16, #tpu.memory_space<vmem>>, vector<512x256xbf16>
    %6 = arith.extf %5 : vector<512x256xbf16> to vector<512x256xf32>
    %cst = arith.constant dense<0.000000e+00> : vector<8x256xf32>
    %7 = tpu.matmul %4, %6, %cst {dimension_numbers = #tpu.dot_dimension_numbers<[1], [0], [0], [1], [0, 0, 1, 1], [], []>} : vector<8x512xf32>, vector<512x256xf32>, vector<8x256xf32> -> vector<8x256xf32>
    %8 = arith.addf %3, %7 : vector<8x256xf32>
    %c0_6 = arith.constant 0 : index
    %c0_7 = arith.constant 0 : index
    %9 = vector.load %arg7[%c0_6, %c0_7] : memref<8x256xf32, #tpu.memory_space<vmem>>, vector<8x256xf32>
    tpu.vector_store %arg7[%c0_6, %c0_7], %8 {strides = array<i32>} : memref<8x256xf32, #tpu.memory_space<vmem>>, vector<8x256xf32>,
    %c0_i32_8 = arith.constant 0 : i32
    %10 = arith.cmpi eq, %arg1, %c0_i32_8 : i32
    %11 = arith.extui %10 : i1 to i32
    %c0_i32_9 = arith.constant 0 : i32
    %12 = arith.cmpi ne, %11, %c0_i32_9 : i32
    scf.if %12 {
      %c0_10 = arith.constant 0 : index
      %c0_11 = arith.constant 0 : index
      %13 = vector.load %arg7[%c0_10, %c0_11] : memref<8x256xf32, #tpu.memory_space<vmem>>, vector<8x256xf32>
      %c0_12 = arith.constant 0 : index
      %c0_13 = arith.constant 0 : index
      %14 = vector.load %arg5[%c0_12, %c0_13] : memref<1x256xf32, #tpu.memory_space<vmem>>, vector<1x256xf32>
      %15 = vector.broadcast %14 : vector<1x256xf32> to vector<8x256xf32>
      %16 = arith.mulf %13, %15 : vector<8x256xf32>
      %c0_14 = arith.constant 0 : index
      %c0_15 = arith.constant 0 : index
      %17 = vector.load %arg4[%c0_14, %c0_15] : memref<8x256xf32, #tpu.memory_space<vmem>>, vector<8x256xf32>
      %18 = arith.addf %16, %17 : vector<8x256xf32>
      %c0_16 = arith.constant 0 : index
      %c0_17 = arith.constant 0 : index
      %19 = vector.load %arg6[%c0_16, %c0_17] : memref<8x256xf32, #tpu.memory_space<vmem>>, vector<8x256xf32>
      tpu.vector_store %arg6[%c0_16, %c0_17], %18 {strides = array<i32>} : memref<8x256xf32, #tpu.memory_space<vmem>>, vector<8x256xf32>,
    } else {
    }
    return
  }
  func.func @transform_0(%arg0: i32, %arg1: i32) -> (i32, i32) {
    %c0_i32 = arith.constant 0 : i32
    %c0_i32_0 = arith.constant 0 : i32
    return %c0_i32, %arg1 : i32, i32
  }
  func.func @transform_1(%arg0: i32, %arg1: i32) -> (i32, i32) {
    %c0_i32 = arith.constant 0 : i32
    return %arg1, %arg0 : i32, i32
  }
  func.func @transform_2(%arg0: i32, %arg1: i32) -> (i32, i32) {
    %c0_i32 = arith.constant 0 : i32
    %c0_i32_0 = arith.constant 0 : i32
    return %c0_i32, %arg0 : i32, i32
  }
  func.func @transform_3(%arg0: i32, %arg1: i32) -> (i32, i32) {
    %c0_i32 = arith.constant 0 : i32
    %c0_i32_0 = arith.constant 0 : i32
    return %c0_i32, %arg0 : i32, i32
  }
  func.func @transform_4(%arg0: i32, %arg1: i32) -> (i32, i32) {
    %c0_i32 = arith.constant 0 : i32
    %c0_i32_0 = arith.constant 0 : i32
    return %c0_i32, %arg0 : i32, i32
  }
}

</mosaic_0001>

<bundles_post_ra>
// kernel: tpu_custom_call.1
= control target key start
LH: loop header
LB: loop body
LE: loop exit
PB: predicated region body
PF: predicated region fallthrough
CT: control target
= control target key end

     0   :  { %s1393_s0 = inlined_call_operand.hbm [shape: f32[8,512], index: 0, kind: input, shape index: {}]   ;;  %s1394_s1 = inlined_call_operand.hbm [shape: bf16[512,512], index: 1, kind: input, shape index: {}]   ;;  %s1395_s2 = inlined_call_operand.hbm [shape: f32[8,512], index: 2, kind: input, shape index: {}]   ;;  %s1396_s3 = inlined_call_operand.vmem [shape: f32[1,512], index: 3, kind: input, shape index: {}]   ;;  %s1397_s4 = inlined_call_operand.hbm [shape: f32[8,512], index: 4, kind: output, shape index: {}]  }
   0x1   :  { %1402 = sst [smem:[#allocation14_spill]] %s1394_s1 }
   0x2   :  { %9 = vsyncpa [#allocation4], 0 }
   0x3   :  { %10 = vsyncpa [#allocation7], 0 }
   0x4   :  { %12 = vsyncpa [#allocation7 + $0x1], 0 }
   0x5   :  { %13 = vsyncpa [#allocation5], 0 }
   0x6   :  { %15 = vsyncpa [#allocation5 + $0x1], 0  ;;  %s1133_s15 = smov 0   ;;  %s1135_s16 = smov 0  }
   0x7   :  { %s1137_s17 = smov 0   ;;  %s1139_s18 = smov 0  }
   0x8   :  { %s1141_s19 = smov 0   ;;  %s1143_s20 = smov 0  }
   0x9 LB: > { %s33_s21 = sadd.s32 1, %s1095_s19  ;;  %s68_s22 = sadd.s32 1, %s1087_s17  ;;  %s1099_s20 = sphi %s1143_s20, %s21_s20   ;;  %s1095_s19 = sphi %s1141_s19, %s1422_s19   ;;  %s1091_s18 = sphi %s1139_s18, %s1421_s18   ;;  %s1087_s17 = sphi %s1137_s17, %s1420_s17   ;;  %s1083_s16 = sphi %s1135_s16, %s1419_s16   ;;  %s1079_s15 = sphi %s1133_s15, %s1418_s15  }
   0xa   : > { %p35_p0 = scmp.ge.s32.totalorder %s33_s21, 2  ;;  %p75_p1 = scmp.ne.s32.totalorder %s1087_s17, %s1083_s16 }
   0xb   : > { %p76_p2 = scmp.eq.s32.totalorder %s1099_s20, 0  ;;  %p878_p5 = scmp.lt.s32.totalorder %s1099_s20, 2 }
   0xc   : > { %s1424_s21 = smov (%p35_p0, %s33_s21), 0  ;;  %s197_s24 = sand.u32 1, %s1099_s20  }
   0xd   : > { %1403 = sst [smem:[#allocation13_spill]] %s1424_s21  ;;  %p77_p4 = por %p76_p2, %p75_p1 }
   0xe   : > { %s64_s23 = ssub.s32 %s1095_s19, %s1424_s21  ;;  %s199_s25 = sand.u32 1, %s1087_s17  }
   0xf   : > { %p66_p6 = scmp.eq.s32.totalorder %s64_s23, 0  ;;  %s849_s26 = sshll.u32 %s1095_s19, 7 }
  0x10   : > { %s832_s28 = sshll.u32 %s199_s25, 9  ;;  %s1404_s1 = sld [smem:[#allocation14_spill]] }
  0x11   : > { %s1181_s27 = scalar_select %p66_p6, %s1087_s17, %s68_s22  }
  0x12   : > { %p1188_p7 = pnand %p878_p5, %p77_p4  ;;  %s201_s7 = scalar_lea.vmem [#allocation6], %s832_s28 }
  0x13   : > { %s211_s8 = sshll.u32 %s201_s7, 4  ;;  %s1192_s9 = scalar_lea.sflag [#allocation7], %s197_s24  ;;  %s212_s8 = int_to_ptr.vmem [resolvable:$true] %s211_s8 }
  0x14   : > { %p935_p8 = pneg %p1188_p7  ;;  %s946_s10 = scalar_lea.vmem %s212_s8, 8192 }
  0x15   : > { %p947_p9 = scmp.ne.s32.totalorder %s212_s8, %s946_s10  ;;  %s1101_s11 = smov [#allocation6]  }
  0x16   : > { %s210_s5 = scalar_lea.hbm %s1404_s1, %s849_s26  ;;  %s951_s12 = sshll.u32 %s1101_s11, 4  ;;  %s952_s12 = int_to_ptr.vmem [resolvable:$false] %s951_s12 }
  0x17   : > { %p949_p10 = pnand %p947_p9, %p935_p8  ;;  %s953_s13 = scalar_lea.vmem %s952_s12, 16384 }
  0x18   : > { %p954_p12 = scmp.lt.s32.totalorder %s212_s8, %s952_s12  ;;  %p955_p13 = scmp.lt.s32.totalorder %s953_s13, %s946_s10 }
  0x19   : > { %p950_p11 = pneg %p949_p10 }
  0x1a   : > { %p956_p0 = por %p955_p13, %p954_p12 }
  0x1c   : > { %p957_p2 = pnand %p956_p0, %p950_p11 }
  0x1e   : > { %960 = shalt.err (!%p957_p2)
}
  0x1f   : > { %s1102_s14 = smov 256   ;;  %s1103_s22 = smov 128  }
  0x20   : > { %s1104_s23 = smov 8   ;;  %s1203_s24 = sadd.s32 4294967295, %s1099_s20  }
  0x21   : > { %869 = dma.hbm_to_vmem [thread:$0]  (!%p1188_p7), %s210_s5, 8192, %s212_s8, %s1192_s9, %s1102_s14, %s1103_s22, %s1104_s23  }
  0x22   : > { %s828_s26 = sadd.s32 4294967294, %s1099_s20   ;;  %p81_p4 = scmp.ne.s32.totalorder %s1083_s16, %s1079_s15 }
  0x23   : > { %p1400_p5 = scmp.eq.s32.totalorder %s1203_s24, 0  ;;  %p157_p6 = scmp.eq.s32.totalorder %s1203_s24, 1 }
  0x24   : > { %p163_p9 = scmp.eq.s32.totalorder %s828_s26, 1  ;;  %p829_p11 = scmp.ge.s32.totalorder %s1099_s20, 1 }
  0x25   : > { %p1212_p10 = por %p1400_p5, %p81_p4  ;;  %p1220_p12 = por %p157_p6, %p75_p1 }
  0x26   : > { %p1224_p13 = por %p163_p9, %p81_p4  ;;  %p170_p0 = scmp.lt.s32.totalorder %s1099_s20, 3 }
  0x27   : > { %s1406_s28 = scalar_select %p1212_p10, 1, 0 }
  0x28   : > { %s1407_s29 = scalar_select %p1220_p12, 1, 0 }
  0x29   : > { %s1408_s30 = scalar_select %p1224_p13, 1, 0 }
  0x2a   : > { %s835_s5 = sshll.u32 %s199_s25, 4  ;;  %p1231_p2 = pnand %p829_p11, %p170_p0 }
  0x2b   : > { %s1105_s8 = smov [#allocation3]   ;;  %s850_s11 = sshll.u32 %s1095_s19, 8 }
  0x2c   : > { %s186_s10 = sshll.u32 %s1105_s8, 4  ;;  %p862_p1 = pneg %p1231_p2  ;;  %s1235_s10 = int_to_ptr.vmem [resolvable:$true] %s186_s10 }
  0x2d   : > { %s231_s14 = scalar_lea.hbm %s1395_s2, %s850_s11  ;;  %s225_s22 = scalar_lea.vmem [#allocation8], %s835_s5 }
  0x2e   : > { %s233_s23 = sshll.u32 %s225_s22, 4  ;;  %p1245_p4 = pnand %p862_p1, %p1400_p5  ;;  %s234_s23 = int_to_ptr.vmem [resolvable:$true] %s233_s23 }
  0x2f   : > { %s974_s26 = scalar_lea.vmem %s234_s23, 256  ;;  %s1106_s8 = smov [#allocation8]  }
  0x30   : > { %p975_p6 = scmp.ne.s32.totalorder %s234_s23, %s974_s26  ;;  %s979_s1 = sshll.u32 %s1106_s8, 4  ;;  %s980_s1 = int_to_ptr.vmem [resolvable:$false] %s979_s1 }
  0x31   : > { %s981_s21 = scalar_lea.vmem %s980_s1, 512  ;;  %p982_p0 = scmp.lt.s32.totalorder %s234_s23, %s980_s1 }
  0x32   : > { %p977_p9 = pnand %p975_p6, %p935_p8  ;;  %p983_p3 = scmp.lt.s32.totalorder %s981_s21, %s974_s26 }
  0x34   : > { %p978_p11 = pneg %p977_p9  ;;  %p984_p13 = por %p983_p3, %p982_p0 }
  0x36   : > { %p985_p12 = pnand %p984_p13, %p978_p11 }
  0x38   : > { %988 = shalt.err (!%p985_p12)
}
  0x39   : > { %872 = dma.hbm_to_vmem [thread:$0]  (!%p1188_p7), %s231_s14, 256, %s234_s23, %s1192_s9  }
  0x3a   : > { %p991_p8 = pneg %p1245_p4  ;;  %s1000_s5 = scalar_lea.vmem %s1235_s10, 512 }
  0x3b   : > { %p1001_p1 = scmp.ne.s32.totalorder %s1235_s10, %s1000_s5  ;;  %p1008_p5 = scmp.lt.s32.totalorder %s1235_s10, %s1235_s10 }
  0x3c   : > { %p1009_p10 = scmp.lt.s32.totalorder %s1000_s5, %s1000_s5 }
  0x3d   : > { %p1003_p6 = pnand %p1001_p1, %p991_p8 }
  0x3e   : > { %p1010_p3 = por %p1009_p10, %p1008_p5 }
  0x3f   : > { %p1004_p9 = pneg %p1003_p6 }
  0x41   : > { %p1011_p13 = pnand %p1010_p3, %p1004_p9 }
  0x43   : > { %1014 = shalt.err (!%p1011_p13)
}
  0x44   : > { %865 = dma.hbm_to_vmem [thread:$0]  (!%p1245_p4), %s1393_s0, 512, %s1235_s10, [#allocation4]  }
  0x45   : > { %250 = sbr.rel (%p1231_p2) target bundleno = 363 (0x16b), region = 36  ;;  %p1411_p7 = scmp.eq.s32.totalorder (!%p1231_p2), %s1203_s24, 0 }
  0x4a   : > { %1066 = dma.done.wait (%p1411_p7), [#allocation4], 512   ;;  %p1412_p12 = pmov %p1411_p7 }
  0x4b   : > { %s256_s6 = sand.u32 1, %s1203_s24   ;;  %s1275_s9 = sand.u32 1, %s1083_s16  }
  0x4c   : > { %1068 = vsyncadd (%p1412_p12), [#allocation4], 4294966784  ;;  %s840_s11 = sshll.u32 %s1275_s9, 9  ;;  %s257_s12 = scalar_lea.sflag [#allocation7], %s256_s6 }
  0x4d   : > { %s1278_s13 = scalar_lea.vmem [#allocation6], %s840_s11  ;;  %p1413_p5 = scmp.ne.s32.totalorder %s1406_s28, 0 }
  0x4f   : > { %1070 = dma.done.wait (%p1413_p5), %s257_s12, 8448  }
  0x50   : > { %1072 = vsyncadd (%p1413_p5), %s257_s12, 4294958848  ;;  %v340_v0 = vld [vmem:[%s1278_s13 + $0x78] sm:$0xff]  ;;  %v339_v2 = vld [vmem:[%s1278_s13 + $0x70] sm:$0xff]  ;;  %s843_s24 = sshll.u32 %s1091_s18, 1  ;;  %s841_s14 = sshll.u32 %s1275_s9, 4 }
  0x51   : > { %v372_v1 = vld [vmem:[%s1278_s13 + $0x178] sm:$0xff]  ;;  %v420_v3 = vunpack.c.h.bf16 %v340_v0  ;;  %v419_v5 = vunpack.c.l.bf16 %v340_v0  ;;  %v371_v7 = vld [vmem:[%s1278_s13 + $0x170] sm:$0xff]  ;;  %v338_v8 = vld [vmem:[%s1278_s13 + $0x68] sm:$0xff]  ;;  %v418_v10 = vunpack.c.h.bf16 %v339_v2  ;;  %v417_v12 = vunpack.c.l.bf16 %v339_v2  ;;  %p308_p10 = scmp.lt.s32.totalorder %s843_s24, 3  ;;  %s269_s22 = scalar_lea.vmem [#allocation8], %s841_s14 }
  0x52   : > { %v484_v4 = vunpack.c.h.bf16 %v372_v1  ;;  %v483_v6 = vunpack.c.l.bf16 %v372_v1  ;;  %v370_v9 = vld [vmem:[%s1278_s13 + $0x168] sm:$0xff]  ;;  %v482_v11 = vunpack.c.h.bf16 %v371_v7  ;;  %v481_v13 = vunpack.c.l.bf16 %v371_v7  ;;  %v337_v14 = vld [vmem:[%s1278_s13 + $0x60] sm:$0xff]  ;;  %v336_v20 = vld [vmem:[%s1278_s13 + $0x58] sm:$0xff]  ;;  %s851_s23 = sshll.u32 %s1091_s18, 8  ;;  %s302_s25 = scalar_lea.vmem [#allocation9], %s841_s14 }
  0x53   : > { %v369_v15 = vld [vmem:[%s1278_s13 + $0x160] sm:$0xff]  ;;  %517 = vmatprep.subr.mxu0 %v420_v3  ;;  %v416_v16 = vunpack.c.h.bf16 %v338_v8  ;;  %v480_v17 = vunpack.c.h.bf16 %v370_v9  ;;  %v415_v18 = vunpack.c.l.bf16 %v338_v8  ;;  %v479_v19 = vunpack.c.l.bf16 %v370_v9  ;;  %v368_v21 = vld [vmem:[%s1278_s13 + $0x158] sm:$0xff]  ;;  %v335_v26 = vld [vmem:[%s1278_s13 + $0x50] sm:$0xff]  ;;  %s1426_s24 = smov (!%p308_p10, %s843_s24), 3  ;;  %s703_s26 = sshll.u32 %s302_s25, 4  ;;  %s704_s26 = int_to_ptr.vmem [resolvable:$true] %s703_s26 }
  0x54   : > { %588 = vmatprep.subr.mxu1 %v484_v4  ;;  %518 = vmatpush1.msra.mxu0 %v419_v5  ;;  %v414_v22 = vunpack.c.h.bf16 %v337_v14  ;;  %v478_v23 = vunpack.c.h.bf16 %v369_v15  ;;  %v413_v24 = vunpack.c.l.bf16 %v337_v14  ;;  %v477_v25 = vunpack.c.l.bf16 %v369_v15  ;;  %v367_v27 = vld [vmem:[%s1278_s13 + $0x150] sm:$0xff]  ;;  %v334_v32 = vld [vmem:[%s1278_s13 + $0x48] sm:$0xff]  ;;  %v333_v38 = vld [vmem:[%s1278_s13 + $0x40] sm:$0xff]  ;;  %s310_s10 = scalar_lea.vmem %s1396_s3, %s1426_s24  ;;  %s701_s1 = scalar_lea.hbm %s1397_s4, %s851_s23 }
  0x55   : > { %589 = vmatpush1.msra.mxu1 %v483_v6  ;;  %519 = vmatprep.subr.mxu0 %v418_v10  ;;  %v412_v28 = vunpack.c.h.bf16 %v336_v20  ;;  %v476_v29 = vunpack.c.h.bf16 %v368_v21  ;;  %v411_v30 = vunpack.c.l.bf16 %v336_v20  ;;  %v475_v31 = vunpack.c.l.bf16 %v368_v21  ;;  %v366_v33 = vld [vmem:[%s1278_s13 + $0x148] sm:$0xff]  ;;  %v365_v39 = vld [vmem:[%s1278_s13 + $0x140] sm:$0xff]  ;;  %v332_v44 = vld [vmem:[%s1278_s13 + $0x38] sm:$0xff]  ;;  %s689_s21 = scalar_lea.sflag [#allocation5], %s1275_s9  ;;  %s1015_s6 = scalar_lea.vmem %s704_s26, 256 }
  0x56   : > { %590 = vmatprep.subr.mxu1 %v482_v11  ;;  %520 = vmatpush1.msra.mxu0 %v417_v12  ;;  %v410_v34 = vunpack.c.h.bf16 %v335_v26  ;;  %v474_v35 = vunpack.c.h.bf16 %v367_v27  ;;  %v409_v36 = vunpack.c.l.bf16 %v335_v26  ;;  %v473_v37 = vunpack.c.l.bf16 %v367_v27  ;;  %v364_v45 = vld [vmem:[%s1278_s13 + $0x138] sm:$0xff]  ;;  %v331_v50 = vld [vmem:[%s1278_s13 + $0x30] sm:$0xff]  ;;  %v330_v56 = vld [vmem:[%s1278_s13 + $0x28] sm:$0xff]  ;;  %p1016_p2 = scmp.ne.s32.totalorder %s704_s26, %s1015_s6  ;;  %p1414_p4 = scmp.ne.s32.totalorder %s1407_s29, 0 }
  0x57   : > { %591 = vmatpush1.msra.mxu1 %v481_v13  ;;  %521 = vmatprep.subr.mxu0 %v416_v16  ;;  %v408_v40 = vunpack.c.h.bf16 %v334_v32  ;;  %v472_v41 = vunpack.c.h.bf16 %v366_v33  ;;  %v407_v42 = vunpack.c.l.bf16 %v334_v32  ;;  %v471_v43 = vunpack.c.l.bf16 %v366_v33  ;;  %v363_v51 = vld [vmem:[%s1278_s13 + $0x130] sm:$0xff]  ;;  %v362_v57 = vld [vmem:[%s1278_s13 + $0x128] sm:$0xff]  ;;  %v329_v62 = vld [vmem:[%s1278_s13 + $0x20] sm:$0xff]  ;;  %s1107_s11 = smov [#allocation9]  }
  0x58   : > { %592 = vmatprep.subr.mxu1 %v480_v17  ;;  %522 = vmatpush1.msra.mxu0 %v415_v18  ;;  %v406_v46 = vunpack.c.h.bf16 %v333_v38  ;;  %v470_v47 = vunpack.c.h.bf16 %v365_v39  ;;  %v405_v48 = vunpack.c.l.bf16 %v333_v38  ;;  %v469_v49 = vunpack.c.l.bf16 %v365_v39  ;;  %v361_v63 = vld [vmem:[%s1278_s13 + $0x120] sm:$0xff]  ;;  %v328_v4 = vld [vmem:[%s1278_s13 + $0x18] sm:$0xff]  ;;  %v327_v10 = vld [vmem:[%s1278_s13 + $0x10] sm:$0xff]  ;;  %p1017_p11 = pnand %p1016_p2, %p1414_p4  ;;  %s1019_s18 = sshll.u32 %s1107_s11, 4  ;;  %s1020_s18 = int_to_ptr.vmem [resolvable:$false] %s1019_s18 }
  0x59   : > { %593 = vmatpush1.msra.mxu1 %v479_v19  ;;  %523 = vmatprep.subr.mxu0 %v414_v22  ;;  %v404_v52 = vunpack.c.h.bf16 %v332_v44  ;;  %v468_v53 = vunpack.c.h.bf16 %v364_v45  ;;  %v403_v54 = vunpack.c.l.bf16 %v332_v44  ;;  %v467_v55 = vunpack.c.l.bf16 %v364_v45  ;;  %v360_v5 = vld [vmem:[%s1278_s13 + $0x118] sm:$0xff]  ;;  %v359_v11 = vld [vmem:[%s1278_s13 + $0x110] sm:$0xff]  ;;  %v326_v16 = vld [vmem:[%s1278_s13 + $0x8] sm:$0xff]  ;;  %s1021_s12 = scalar_lea.vmem %s1020_s18, 512  ;;  %p1022_p8 = scmp.lt.s32.totalorder %s704_s26, %s1020_s18 }
  0x5a   : > { %594 = vmatprep.subr.mxu1 %v478_v23  ;;  %524 = vmatpush1.msra.mxu0 %v413_v24  ;;  %v402_v58 = vunpack.c.h.bf16 %v331_v50  ;;  %v466_v59 = vunpack.c.h.bf16 %v363_v51  ;;  %v401_v60 = vunpack.c.l.bf16 %v331_v50  ;;  %v465_v61 = vunpack.c.l.bf16 %v363_v51  ;;  %v358_v17 = vld [vmem:[%s1278_s13 + $0x108] sm:$0xff]  ;;  %v325_v22 = vld [vmem:[%s1278_s13] sm:$0xff]  ;;  %p1018_p0 = pneg %p1017_p11  ;;  %p1023_p1 = scmp.lt.s32.totalorder %s1021_s12, %s1015_s6 }
  0x5b   : > { %595 = vmatpush1.msra.mxu1 %v477_v25  ;;  %525 = vmatprep.subr.mxu0 %v412_v28  ;;  %v400_v0 = vunpack.c.h.bf16 %v330_v56  ;;  %v464_v1 = vunpack.c.h.bf16 %v362_v57  ;;  %v399_v2 = vunpack.c.l.bf16 %v330_v56  ;;  %v463_v3 = vunpack.c.l.bf16 %v362_v57  ;;  %v357_v23 = vld [vmem:[%s1278_s13 + $0x100] sm:$0xff]  ;;  %v356_v28 = vld [vmem:[%s1278_s13 + $0xf8] sm:$0xff] }
  0x5c   : > { %596 = vmatprep.subr.mxu1 %v476_v29  ;;  %526 = vmatpush1.msra.mxu0 %v411_v30  ;;  %v398_v6 = vunpack.c.h.bf16 %v329_v62  ;;  %v462_v7 = vunpack.c.h.bf16 %v361_v63  ;;  %v397_v8 = vunpack.c.l.bf16 %v329_v62  ;;  %v461_v9 = vunpack.c.l.bf16 %v361_v63  ;;  %v388_v29 = vld [vmem:[%s1278_s13 + $0x1f8] sm:$0xff]  ;;  %p1024_p6 = por %p1023_p1, %p1022_p8 }
  0x5d   : > { %597 = vmatpush1.msra.mxu1 %v475_v31  ;;  %527 = vmatprep.subr.mxu0 %v410_v34  ;;  %v396_v12 = vunpack.c.h.bf16 %v328_v4  ;;  %v460_v13 = vunpack.c.h.bf16 %v360_v5  ;;  %v395_v14 = vunpack.c.l.bf16 %v328_v4  ;;  %v459_v15 = vunpack.c.l.bf16 %v360_v5  ;;  %v355_v34 = vld [vmem:[%s1278_s13 + $0xf0] sm:$0xff] }
  0x5e   : > { %598 = vmatprep.subr.mxu1 %v474_v35  ;;  %528 = vmatpush1.msra.mxu0 %v409_v36  ;;  %v394_v18 = vunpack.c.h.bf16 %v327_v10  ;;  %v458_v19 = vunpack.c.h.bf16 %v359_v11  ;;  %v393_v20 = vunpack.c.l.bf16 %v327_v10  ;;  %v457_v21 = vunpack.c.l.bf16 %v359_v11  ;;  %v387_v35 = vld [vmem:[%s1278_s13 + $0x1f0] sm:$0xff]  ;;  %p1025_p9 = pnand %p1024_p6, %p1018_p0 }
  0x5f   : > { %599 = vmatpush1.msra.mxu1 %v473_v37  ;;  %529 = vmatprep.subr.mxu0 %v408_v40  ;;  %v392_v24 = vunpack.c.h.bf16 %v326_v16  ;;  %v456_v25 = vunpack.c.h.bf16 %v358_v17  ;;  %v391_v26 = vunpack.c.l.bf16 %v326_v16  ;;  %v455_v27 = vunpack.c.l.bf16 %v358_v17  ;;  %v354_v40 = vld [vmem:[%s1278_s13 + $0xe8] sm:$0xff] }
  0x60   : > { %600 = vmatprep.subr.mxu1 %v472_v41  ;;  %530 = vmatpush1.msra.mxu0 %v407_v42  ;;  %v390_v30 = vunpack.c.h.bf16 %v325_v22  ;;  %v454_v31 = vunpack.c.h.bf16 %v357_v23  ;;  %v389_v32 = vunpack.c.l.bf16 %v325_v22  ;;  %v453_v33 = vunpack.c.l.bf16 %v357_v23  ;;  %v386_v41 = vld [vmem:[%s1278_s13 + $0x1e8] sm:$0xff] }
  0x61   : > { %601 = vmatpush1.msra.mxu1 %v471_v43  ;;  %531 = vmatprep.subr.mxu0 %v406_v46  ;;  %v452_v36 = vunpack.c.h.bf16 %v356_v28  ;;  %v516_v37 = vunpack.c.h.bf16 %v388_v29  ;;  %v451_v38 = vunpack.c.l.bf16 %v356_v28  ;;  %v515_v39 = vunpack.c.l.bf16 %v388_v29  ;;  %v353_v46 = vld [vmem:[%s1278_s13 + $0xe0] sm:$0xff] }
  0x62   : > { %602 = vmatprep.subr.mxu1 %v470_v47  ;;  %532 = vmatpush1.msra.mxu0 %v405_v48  ;;  %v450_v42 = vunpack.c.h.bf16 %v355_v34  ;;  %v514_v43 = vunpack.c.h.bf16 %v387_v35  ;;  %v449_v44 = vunpack.c.l.bf16 %v355_v34  ;;  %v513_v45 = vunpack.c.l.bf16 %v387_v35  ;;  %v385_v47 = vld [vmem:[%s1278_s13 + $0x1e0] sm:$0xff] }
  0x63   : > { %603 = vmatpush1.msra.mxu1 %v469_v49  ;;  %533 = vmatprep.subr.mxu0 %v404_v52  ;;  %v448_v48 = vunpack.c.h.bf16 %v354_v40  ;;  %v512_v49 = vunpack.c.h.bf16 %v386_v41  ;;  %v447_v50 = vunpack.c.l.bf16 %v354_v40  ;;  %v511_v51 = vunpack.c.l.bf16 %v386_v41  ;;  %v352_v52 = vld [vmem:[%s1278_s13 + $0xd8] sm:$0xff] }
  0x64   : > { %604 = vmatprep.subr.mxu1 %v468_v53  ;;  %534 = vmatpush1.msra.mxu0 %v403_v54  ;;  %v384_v53 = vld [vmem:[%s1278_s13 + $0x1d8] sm:$0xff]  ;;  %v446_v54 = vunpack.c.h.bf16 %v353_v46  ;;  %v445_v56 = vunpack.c.l.bf16 %v353_v46  ;;  %v509_v57 = vunpack.c.l.bf16 %v385_v47  ;;  %v443_v62 = vunpack.c.l.bf16 %v352_v52 }
  0x65   : > { %605 = vmatpush1.msra.mxu1 %v467_v55  ;;  %535 = vmatprep.subr.mxu0 %v402_v58  ;;  %v510_v55 = vunpack.c.h.bf16 %v385_v47  ;;  %v351_v58 = vld [vmem:[%s1278_s13 + $0xd0] sm:$0xff]  ;;  %v507_v63 = vunpack.c.l.bf16 %v384_v53 }
  0x66   : > { %606 = vmatprep.subr.mxu1 %v466_v59  ;;  %536 = vmatpush1.msra.mxu0 %v401_v60  ;;  %v383_v59 = vld [vmem:[%s1278_s13 + $0x1d0] sm:$0xff]  ;;  %v444_v60 = vunpack.c.h.bf16 %v352_v52  ;;  %v441_v4 = vunpack.c.l.bf16 %v351_v58 }
  0x67   : > { %607 = vmatpush1.msra.mxu1 %v465_v61  ;;  %537 = vmatprep.subr.mxu0 %v400_v0  ;;  %v508_v61 = vunpack.c.h.bf16 %v384_v53  ;;  %v350_v0 = vld [vmem:[%s1278_s13 + $0xc8] sm:$0xff]  ;;  %v505_v5 = vunpack.c.l.bf16 %v383_v59 }
  0x68   : > { %608 = vmatprep.subr.mxu1 %v464_v1  ;;  %538 = vmatpush1.msra.mxu0 %v399_v2  ;;  %v382_v1 = vld [vmem:[%s1278_s13 + $0x1c8] sm:$0xff]  ;;  %v442_v2 = vunpack.c.h.bf16 %v351_v58  ;;  %v439_v10 = vunpack.c.l.bf16 %v350_v0 }
  0x69   : > { %609 = vmatpush1.msra.mxu1 %v463_v3  ;;  %539 = vmatprep.subr.mxu0 %v398_v6  ;;  %v506_v3 = vunpack.c.h.bf16 %v383_v59  ;;  %v349_v6 = vld [vmem:[%s1278_s13 + $0xc0] sm:$0xff]  ;;  %v503_v11 = vunpack.c.l.bf16 %v382_v1 }
  0x6a   : > { %610 = vmatprep.subr.mxu1 %v462_v7  ;;  %540 = vmatpush1.msra.mxu0 %v397_v8  ;;  %v381_v7 = vld [vmem:[%s1278_s13 + $0x1c0] sm:$0xff]  ;;  %v440_v8 = vunpack.c.h.bf16 %v350_v0  ;;  %v437_v16 = vunpack.c.l.bf16 %v349_v6 }
  0x6b   : > { %611 = vmatpush1.msra.mxu1 %v461_v9  ;;  %541 = vmatprep.subr.mxu0 %v396_v12  ;;  %v504_v9 = vunpack.c.h.bf16 %v382_v1  ;;  %v348_v12 = vld [vmem:[%s1278_s13 + $0xb8] sm:$0xff]  ;;  %v501_v17 = vunpack.c.l.bf16 %v381_v7 }
  0x6c   : > { %612 = vmatprep.subr.mxu1 %v460_v13  ;;  %542 = vmatpush1.msra.mxu0 %v395_v14  ;;  %v380_v13 = vld [vmem:[%s1278_s13 + $0x1b8] sm:$0xff]  ;;  %v438_v14 = vunpack.c.h.bf16 %v349_v6  ;;  %v435_v22 = vunpack.c.l.bf16 %v348_v12 }
  0x6d   : > { %613 = vmatpush1.msra.mxu1 %v459_v15  ;;  %543 = vmatprep.subr.mxu0 %v394_v18  ;;  %v502_v15 = vunpack.c.h.bf16 %v381_v7  ;;  %v347_v18 = vld [vmem:[%s1278_s13 + $0xb0] sm:$0xff]  ;;  %v499_v23 = vunpack.c.l.bf16 %v380_v13  ;;  %v324_v1 = vld [vmem:[#allocation3 + $0x18] sm:$0xff]  ;;  %v668_v7 = vld [vmem:[%s310_s10] sm:$0x3] }
  0x6e   : > { %614 = vmatprep.subr.mxu1 %v458_v19  ;;  %544 = vmatpush1.msra.mxu0 %v393_v20  ;;  %v379_v19 = vld [vmem:[%s1278_s13 + $0x1b0] sm:$0xff]  ;;  %v436_v20 = vunpack.c.h.bf16 %v348_v12  ;;  %v433_v28 = vunpack.c.l.bf16 %v347_v18 }
  0x6f   : > { %615 = vmatpush1.msra.mxu1 %v457_v21  ;;  %545 = vmatprep.subr.mxu0 %v392_v24  ;;  %v500_v21 = vunpack.c.h.bf16 %v380_v13  ;;  %v346_v24 = vld [vmem:[%s1278_s13 + $0xa8] sm:$0xff]  ;;  %v497_v29 = vunpack.c.l.bf16 %v379_v19 }
  0x70   : > { %616 = vmatprep.subr.mxu1 %v456_v25  ;;  %546 = vmatpush1.msra.mxu0 %v391_v26  ;;  %v378_v25 = vld [vmem:[%s1278_s13 + $0x1a8] sm:$0xff]  ;;  %v434_v26 = vunpack.c.h.bf16 %v347_v18  ;;  %v431_v34 = vunpack.c.l.bf16 %v346_v24 }
  0x71   : > { %617 = vmatpush1.msra.mxu1 %v455_v27  ;;  %547 = vmatprep.subr.mxu0 %v390_v30  ;;  %v498_v27 = vunpack.c.h.bf16 %v379_v19  ;;  %v345_v30 = vld [vmem:[%s1278_s13 + $0xa0] sm:$0xff]  ;;  %v495_v35 = vunpack.c.l.bf16 %v378_v25  ;;  %v683_v19 = vld [vmem:[%s269_s22 + $0x8] sm:$0xff] }
  0x72   : > { %618 = vmatprep.subr.mxu1 %v454_v31  ;;  %548 = vmatpush1.msra.mxu0 %v389_v32  ;;  %v377_v31 = vld [vmem:[%s1278_s13 + $0x1a0] sm:$0xff]  ;;  %v432_v32 = vunpack.c.h.bf16 %v346_v24  ;;  %v429_v40 = vunpack.c.l.bf16 %v345_v30 }
  0x73   : > { %619 = vmatpush1.msra.mxu1 %v453_v33  ;;  %549 = vmatprep.subr.mxu0 %v452_v36  ;;  %v496_v33 = vunpack.c.h.bf16 %v378_v25  ;;  %v344_v36 = vld [vmem:[%s1278_s13 + $0x98] sm:$0xff]  ;;  %v493_v41 = vunpack.c.l.bf16 %v377_v31 }
  0x74   : > { %620 = vmatprep.subr.mxu1 %v516_v37  ;;  %550 = vmatpush2.msra.mxu0 %v451_v38  ;;  %v376_v37 = vld [vmem:[%s1278_s13 + $0x198] sm:$0xff]  ;;  %v430_v38 = vunpack.c.h.bf16 %v345_v30  ;;  %v427_v46 = vunpack.c.l.bf16 %v344_v36 }
  0x75   : > { %621 = vmatpush2.msra.mxu1 %v515_v39  ;;  %551 = vmatprep.subr.mxu0 %v450_v42  ;;  %v494_v39 = vunpack.c.h.bf16 %v377_v31  ;;  %v343_v42 = vld [vmem:[%s1278_s13 + $0x90] sm:$0xff]  ;;  %v491_v47 = vunpack.c.l.bf16 %v376_v37 }
  0x76   : > { %622 = vmatprep.subr.mxu1 %v514_v43  ;;  %552 = vmatpush2.msra.mxu0 %v449_v44  ;;  %v375_v43 = vld [vmem:[%s1278_s13 + $0x190] sm:$0xff]  ;;  %v428_v44 = vunpack.c.h.bf16 %v344_v36  ;;  %v425_v52 = vunpack.c.l.bf16 %v343_v42 }
  0x77   : > { %623 = vmatpush2.msra.mxu1 %v513_v45  ;;  %553 = vmatprep.subr.mxu0 %v448_v48  ;;  %v492_v45 = vunpack.c.h.bf16 %v376_v37  ;;  %v342_v48 = vld [vmem:[%s1278_s13 + $0x88] sm:$0xff]  ;;  %v489_v53 = vunpack.c.l.bf16 %v375_v43 }
  0x78   : > { %624 = vmatprep.subr.mxu1 %v512_v49  ;;  %554 = vmatpush2.msra.mxu0 %v447_v50  ;;  %v374_v49 = vld [vmem:[%s1278_s13 + $0x188] sm:$0xff]  ;;  %v426_v50 = vunpack.c.h.bf16 %v343_v42  ;;  %v423_v58 = vunpack.c.l.bf16 %v342_v48 }
  0x79   : > { %625 = vmatpush2.msra.mxu1 %v511_v51  ;;  %555 = vmatprep.subr.mxu0 %v446_v54  ;;  %v490_v51 = vunpack.c.h.bf16 %v375_v43  ;;  %v341_v54 = vld [vmem:[%s1278_s13 + $0x80] sm:$0xff]  ;;  %v487_v59 = vunpack.c.l.bf16 %v374_v49 }
  0x7a   : > { %626 = vmatprep.subr.mxu1 %v510_v55  ;;  %556 = vmatpush2.msra.mxu0 %v445_v56  ;;  %v373_v55 = vld [vmem:[%s1278_s13 + $0x180] sm:$0xff]  ;;  %v424_v56 = vunpack.c.h.bf16 %v342_v48 }
  0x7b   : > { %627 = vmatpush2.msra.mxu1 %v509_v57  ;;  %557 = vmatprep.subr.mxu0 %v444_v60  ;;  %v488_v57 = vunpack.c.h.bf16 %v374_v49  ;;  %v422_v60 = vunpack.c.h.bf16 %v341_v54  ;;  %v485_v0 = vunpack.c.l.bf16 %v373_v55 }
  0x7c   : > { %628 = vmatprep.subr.mxu1 %v508_v61  ;;  %558 = vmatpush2.msra.mxu0 %v443_v62  ;;  %v486_v61 = vunpack.c.h.bf16 %v373_v55  ;;  %v421_v62 = vunpack.c.l.bf16 %v341_v54 }
  0x7d   : > { %629 = vmatpush2.msra.mxu1 %v507_v63  ;;  %559 = vmatprep.subr.mxu0 %v442_v2  ;;  %v322_v63 = vld [vmem:[#allocation3 + $0x8] sm:$0xff]  ;;  %v321_v2 = vld [vmem:[#allocation3] sm:$0xff] }
  0x7e   : > { %630 = vmatprep.subr.mxu1 %v506_v3  ;;  %560 = vmatpush2.msra.mxu0 %v441_v4  ;;  %v323_v3 = vld [vmem:[#allocation3 + $0x10] sm:$0xff]  ;;  %v670_v4 = vlaneseq }
  0x7f   : > { %631 = vmatpush2.msra.mxu1 %v505_v5  ;;  %561 = vmatprep.subr.mxu0 %v440_v8 }
  0x80   : > { %632 = vmatprep.subr.mxu1 %v504_v9  ;;  %562 = vmatpush2.msra.mxu0 %v439_v10  ;;  %v671_v5 = vshrl.u32 %v670_v4, 7 }
  0x81   : > { %633 = vmatpush2.msra.mxu1 %v503_v11  ;;  %563 = vmatprep.subr.mxu0 %v438_v14  ;;  %v682_v14 = vld [vmem:[%s269_s22] sm:$0xff] }
  0x82   : > { %634 = vmatprep.subr.mxu1 %v502_v15  ;;  %564 = vmatpush2.msra.mxu0 %v437_v16  ;;  %v672_v6 = vsub.s32 0, %v671_v5  ;;  %v676_v8 = vsub.s32 1, %v671_v5 }
  0x83   : > { %635 = vmatpush2.msra.mxu1 %v501_v17  ;;  %565 = vmatprep.subr.mxu0 %v436_v20 }
  0x84   : > { %636 = vmatprep.subr.mxu1 %v500_v21  ;;  %566 = vmatpush2.msra.mxu0 %v435_v22  ;;  %v673_v9 = vrot.slane %v668_v7, %v672_v6  ;;  %v677_v13 = vrot.slane %v668_v7, %v676_v8 }
  0x85   : > { %637 = vmatpush2.msra.mxu1 %v499_v23  ;;  %567 = vmatprep.subr.mxu0 %v434_v26 }
  0x86   : > { %638 = vmatprep.subr.mxu1 %v498_v27  ;;  %568 = vmatpush2.msra.mxu0 %v433_v28 }
  0x87   : > { %639 = vmatpush2.msra.mxu1 %v497_v29  ;;  %569 = vmatprep.subr.mxu0 %v432_v32 }
  0x88   : > { %640 = vmatprep.subr.mxu1 %v496_v33  ;;  %570 = vmatpush2.msra.mxu0 %v431_v34 }
  0x89   : > { %641 = vmatpush2.msra.mxu1 %v495_v35  ;;  %571 = vmatprep.subr.mxu0 %v430_v38 }
  0x8a   : > { %642 = vmatprep.subr.mxu1 %v494_v39  ;;  %572 = vmatpush2.msra.mxu0 %v429_v40 }
  0x8b   : > { %643 = vmatpush2.msra.mxu1 %v493_v41  ;;  %573 = vmatprep.subr.mxu0 %v428_v44 }
  0x8c   : > { %644 = vmatprep.subr.mxu1 %v492_v45  ;;  %574 = vmatpush2.msra.mxu0 %v427_v46 }
  0x8d   : > { %645 = vmatpush2.msra.mxu1 %v491_v47  ;;  %575 = vmatprep.subr.mxu0 %v426_v50 }
  0x8e   : > { %646 = vmatprep.subr.mxu1 %v490_v51  ;;  %576 = vmatpush2.msra.mxu0 %v425_v52 }
  0x8f   : > { %647 = vmatpush2.msra.mxu1 %v489_v53  ;;  %577 = vmatprep.subr.mxu0 %v424_v56 }
  0x90   : > { %648 = vmatprep.subr.mxu1 %v488_v57  ;;  %578 = vmatpush2.msra.mxu0 %v423_v58 }
  0x91   : > { %649 = vmatpush2.msra.mxu1 %v487_v59  ;;  %579 = vmatprep.subr.mxu0 %v422_v60 }
  0x92   : > { %650 = vmatprep.subr.mxu1 %v486_v61  ;;  %580 = vmatpush2.msra.mxu0 %v421_v62 }
  0x93   : > { %581 = vmatprep.mubr.f32.mxu0 %v322_v63  ;;  %651 = vmatpush2.msra.mxu1 %v485_v0 }
  0x94   : > { %652 = vmatprep.mubr.f32.mxu1 %v324_v1  ;;  %582 = vmatmul.mubr.f32.vlgmr.msra.gmra.mxu0 %v321_v2 }
  0x95   : > { %653 = vmatmul.mubr.f32.vlgmr.msra.gmra.mxu1 %v323_v3 }
 0x154   : > { %v583_v10 = vpop.f32.mrf.mxu0 }
 0x155   : > { %v654_v11 = vpop.f32.mrf.mxu1 }
 0x156   : > { %v655_v12 = vadd.f32 %v654_v11, %v583_v10  ;;  %v585_v15 = vpop.f32.mrf.mxu0 }
 0x157   : > { %v656_v16 = vpop.f32.mrf.mxu1 }
 0x158   : > { %v680_v17 = vmul.f32 %v673_v9, %v655_v12  ;;  %v657_v18 = vadd.f32 %v656_v16, %v585_v15 }
 0x15a   : > { %v684_v20 = vadd.f32 %v682_v14, %v680_v17  ;;  %v681_v21 = vmul.f32 %v677_v13, %v657_v18 }
 0x15c   : > { %686 = vst [vmem:[%s302_s25] sm:$0xff] %v684_v20  ;;  %v685_v22 = vadd.f32 %v683_v19, %v681_v21 }
 0x15e   : > { %687 = vst [vmem:[%s302_s25 + $0x8] sm:$0xff] %v685_v22 }
 0x15f   : > { %1028 = shalt.err (!%p1025_p9)
}
 0x160   : > { %s1029_s13 = scalar_lea.hbm %s701_s1, 256  ;;  %s1033_s28 = scalar_lea.hbm %s1397_s4, 512 }
 0x161   : > { %p1030_p3 = scmp.ne.s32.totalorder %s701_s1, %s1029_s13  ;;  %p1034_p12 = scmp.lt.s32.totalorder %s701_s1, %s1397_s4 }
 0x162   : > { %p1035_p5 = scmp.lt.s32.totalorder %s1033_s28, %s1029_s13 }
 0x163   : > { %p1031_p13 = pnand %p1030_p3, %p1414_p4 }
 0x164   : > { %p1036_p10 = por %p1035_p5, %p1034_p12 }
 0x165   : > { %p1032_p7 = pneg %p1031_p13 }
 0x167   : > { %p1037_p2 = pnand %p1036_p10, %p1032_p7 }
 0x169   : > { %1040 = shalt.err (!%p1037_p2)
}
 0x16a   : > { %860 = dma.vmem_to_hbm [thread:$0]  (%p1414_p4), %s704_s26, 256, %s701_s1, %s689_s21  }
 0x16b PF: > { %s715_s14 = sand.u32 1, %s1079_s15   ;;  %p1415_p11 = scmp.ne.s32.totalorder %s1408_s30, 0 }
 0x16c   : > { %p1416_p0 = scmp.ge.s32.totalorder %s1099_s20, 2  ;;  %s716_s22 = scalar_lea.sflag [#allocation5], %s715_s14 }
 0x16e   : > { %p874_p8 = pnand %p1416_p0, %p1415_p11 }
 0x170   : > { %p875_p1 = pneg %p874_p8 }
 0x172   : > { %1074 = dma.done.wait (%p875_p1), %s716_s22, 256  }
 0x173   : > { %1076 = vsyncadd (%p875_p1), %s716_s22, 4294967040  ;;  %s21_s20 = sadd.s32 1, %s1099_s20   ;;  %s1417_s29 = sld [smem:[#allocation13_spill]] }
 0x174   : > { %p18_p6 = scmp.ge.s32.totalorder %s21_s20, 4   ;;  %s1418_s15 = smov %s1083_s16 }
 0x175   : > { %s1419_s16 = smov %s1087_s17  ;;  %s1420_s17 = smov %s1181_s27 }
 0x176   : > { %s1421_s18 = smov %s1095_s19  ;;  %20 = sbr.rel (!%p18_p6) target bundleno = 9 (0x9), region = 109 }
 0x179   : > { %s1422_s19 = smov %s1417_s29 }
 0x17b   :  { %721 = vsyncpa [#allocation4], 1 }
 0x17c   :  { %723 = vsyncpa [#allocation4 + $0x1], 1 }
 0x17d   :  { %724 = vsyncpa [#allocation7], 1 }
 0x17e   :  { %726 = vsyncpa [#allocation7 + $0x1], 1 }
 0x17f   :  { %727 = vsyncpa [#allocation5], 1 }
 0x180   :  { %729 = vsyncpa [#allocation5 + $0x1], 1 }

</bundles_post_ra>
